<compile_context>
chip_gen: v6e
topology: v6e:2x2x1
jax: 0.10.0
libtpu: 0.0.40
codegen_flags: <defaults>
</compile_context>

<pallas_src>
import functools

import jax
import jax.numpy as jnp
from jax import lax
from jax.experimental import pallas as pl
from jax.experimental.pallas import tpu as pltpu

SIMILAR_TARGET = 0.9
DISSIMILAR_TARGET = 0.1
SIMILAR_TYPES = {"synonym_noun", "synonym_verb", "out_set"}
_EPS = 1e-8                      # torch.nn.functional.cosine_similarity default eps
_LANE = 128                      # lane-dense width for the per-row output / target
_TB = 8                          # batch rows per tile (sublane multiple)
_TILE_BYTES = 4 * 1024 * 1024    # per-input tile budget: 3 inputs x 2 buffers ~ 24 MiB
                                 # (fits the 48 MiB vmem limit we request -> safe on v7x's 64 MiB)


def _round_up(x, m):
    return (x + m - 1) // m * m


def _contrastive_loss_kernel(tgt_ref, img_ref, pos_ref, neg_ref, out_ref,
                             img_acc, pos_acc, neg_acc):
    """grid = (B_pad // TB, S_pad // TS); the S axis is the trailing reduction axis."""
    s = pl.program_id(1)

    @pl.when(s == 0)
    def _init():
        img_acc[...] = jnp.zeros_like(img_acc)
        pos_acc[...] = jnp.zeros_like(pos_acc)
        neg_acc[...] = jnp.zeros_like(neg_acc)

    # Stream native-dtype (bf16/f32) tiles, accumulate the sequence reduction in f32.
    img_acc[...] += jnp.sum(img_ref[...].astype(jnp.float32), axis=1)
    pos_acc[...] += jnp.sum(pos_ref[...].astype(jnp.float32), axis=1)
    neg_acc[...] += jnp.sum(neg_ref[...].astype(jnp.float32), axis=1)

    @pl.when(s == pl.num_programs(1) - 1)
    def _finalize():
        a = img_acc[...]                     # [TB, D] f32 (sum over S; mean not needed)
        p = pos_acc[...]
        n = neg_acc[...]
        eps2 = jnp.float32(_EPS * _EPS)
        a2 = jnp.maximum(jnp.sum(a * a, axis=-1, keepdims=True), eps2)   # img norm^2, shared
        p2 = jnp.maximum(jnp.sum(p * p, axis=-1, keepdims=True), eps2)
        n2 = jnp.maximum(jnp.sum(n * n, axis=-1, keepdims=True), eps2)
        dp = jnp.sum(a * p, axis=-1, keepdims=True)
        dn = jnp.sum(a * n, axis=-1, keepdims=True)
        # rsqrt(max(|a|^2,eps^2) * max(|b|^2,eps^2)) == 1/(max(|a|,eps)*max(|b|,eps)),
        # i.e. exactly PyTorch's eps-clamped cosine; rsqrt runs on the otherwise-idle EUP.
        s_pos = dp * lax.rsqrt(a2 * p2)      # [TB, 1]
        s_neg = dn * lax.rsqrt(a2 * n2)      # [TB, 1]
        tgt = tgt_ref[...]                   # [TB, LANE] per-row target (lane-broadcast)
        # (similar_target - s_neg)^2 == (s_neg - similar_target)^2, so one squared
        # difference against a per-row target covers both branches of the module.
        loss = (1.0 - s_pos) ** 2 + (s_neg - tgt) ** 2   # broadcast -> [TB, LANE]
        out_ref[...] = loss


@functools.partial(jax.jit, static_argnames=("tb", "ts"))
def _per_row_losses(img, pos, neg, target, *, tb=None, ts=None):
    """Returns the per-row loss_pos + loss_neg, shape [B], computed by the kernel."""
    B, S, D = img.shape
    itemsize = jnp.dtype(img.dtype).itemsize
    tb = _TB if tb is None else tb
    if ts is None:
        max_ts = max(8, (_TILE_BYTES // max(1, tb * D * itemsize)) // 8 * 8)
        ts = min(max_ts, _round_up(S, 8))
    b_pad = _round_up(B, tb)
    s_pad = _round_up(S, ts)

    def pad(x):   # zero S-rows add nothing to the sums; padded B rows are sliced off below
        return jnp.pad(x, ((0, b_pad - B), (0, s_pad - S), (0, 0)))

    img_p, pos_p, neg_p = pad(img), pad(pos), pad(neg)
    tgt = jnp.broadcast_to(
        jnp.pad(target.astype(jnp.float32), (0, b_pad - B))[:, None],
        (b_pad, _LANE))

    grid = (b_pad // tb, s_pad // ts)
    emb_spec = pl.BlockSpec((tb, ts, D), lambda b, s: (b, s, 0))
    row_spec = pl.BlockSpec((tb, _LANE), lambda b, s: (b, 0))

    cost = pl.CostEstimate(
        flops=int(6 * b_pad * s_pad * D + 12 * b_pad * D),
        transcendentals=int(2 * b_pad),
        bytes_accessed=int(3 * b_pad * s_pad * D * itemsize + 2 * b_pad * _LANE * 4),
    )

    per_row = pl.pallas_call(
        _contrastive_loss_kernel,
        out_shape=jax.ShapeDtypeStruct((b_pad, _LANE), jnp.float32),
        grid=grid,
        in_specs=[row_spec, emb_spec, emb_spec, emb_spec],
        out_specs=row_spec,
        scratch_shapes=[
            pltpu.VMEM((tb, D), jnp.float32),
            pltpu.VMEM((tb, D), jnp.float32),
            pltpu.VMEM((tb, D), jnp.float32),
        ],
        compiler_params=pltpu.CompilerParams(
            dimension_semantics=("parallel", "arbitrary"),
            vmem_limit_bytes=48 * 1024 * 1024,
        ),
        cost_estimate=cost,
    )(tgt, img_p, pos_p, neg_p)

    # Tiny epilogue: real batch rows only, lane 0 of the lane-broadcast loss.
    return per_row[:B, 0]


def conditional_contrastive_loss(image_embeddings, pos_text_embeddings,
                                 neg_text_embeddings, transform_types,
                                 *, tb=None, ts=None):
    """image/pos/neg embeddings: [B, S, D]; transform_types: list[str] of length B."""
    b = image_embeddings.shape[0]
    assert len(transform_types) == b
    # Strings cannot enter a kernel: convert once on the host to per-row numeric
    # targets (callers in a training loop should precompute & reuse this array).
    target = jnp.asarray(
        [SIMILAR_TARGET if t in SIMILAR_TYPES else DISSIMILAR_TARGET
         for t in transform_types],
        dtype=jnp.float32)
    per_row = _per_row_losses(image_embeddings, pos_text_embeddings,
                              neg_text_embeddings, target, tb=tb, ts=ts)
    return jnp.sum(per_row) / (2.0 * b)


def _reference_loss(img, pos, neg, transform_types):
    # Pure-JAX reference matching the PyTorch module (f32 math).
    img_m = jnp.mean(img.astype(jnp.float32), axis=1)
    pos_m = jnp.mean(pos.astype(jnp.float32), axis=1)
    neg_m = jnp.mean(neg.astype(jnp.float32), axis=1)

    def cos(a, b):
        dot = jnp.sum(a * b, axis=-1)
        na = jnp.maximum(jnp.linalg.norm(a, axis=-1), _EPS)
        nb = jnp.maximum(jnp.linalg.norm(b, axis=-1), _EPS)
        return dot / (na * nb)

    s_pos = cos(img_m, pos_m)
    s_neg = cos(img_m, neg_m)
    loss = 0.0
    for i, t in enumerate(transform_types):
        loss_pos = (1.0 - s_pos[i]) ** 2
        if t in SIMILAR_TYPES:
            loss_neg = (SIMILAR_TARGET - s_neg[i]) ** 2
        else:
            loss_neg = (s_neg[i] - DISSIMILAR_TARGET) ** 2
        loss += loss_pos + loss_neg
    return loss / (2 * len(transform_types))


def _run_case(key, B, S, D, dtype, types, **tile_kw):
    k1, k2, k3 = jax.random.split(key, 3)
    img = jax.random.normal(k1, (B, S, D), dtype=jnp.float32).astype(dtype)
    pos = jax.random.normal(k2, (B, S, D), dtype=jnp.float32).astype(dtype)
    neg = jax.random.normal(k3, (B, S, D), dtype=jnp.float32).astype(dtype)
    out = conditional_contrastive_loss(img, pos, neg, types, **tile_kw)
    out = jax.block_until_ready(out)
    ref = _reference_loss(img, pos, neg, types)
    assert jnp.allclose(out, ref, atol=1e-4, rtol=1e-4), (out, ref)


if __name__ == "__main__":
    key = jax.random.PRNGKey(0)
    k_a, k_b, k_c = jax.random.split(key, 3)

    # Case 1: module-sized small test, f32, default tiling (single grid step).
    _run_case(k_a, B=2, S=8, D=32, dtype=jnp.float32,
              types=["synonym_noun", "antonym"])

    # Case 2: exercise B/S zero-padding and the multi-step S accumulator path
    # (forced ts=8 -> 3 sequence grid steps).
    _run_case(k_b, B=3, S=24, D=32, dtype=jnp.float32,
              types=["out_set", "antonym", "synonym_verb"], ts=8)

    # Case 3: bf16 inputs streamed in native dtype, f32 accumulation in-kernel.
    _run_case(k_c, B=2, S=8, D=32, dtype=jnp.bfloat16,
              types=["synonym_verb", "random"])

    print("KERNEL_OK")
</pallas_src>

<mosaic_0001>
module attributes {stable_mosaic.version = 11 : i64} {
  func.func @_contrastive_loss_kernel(%arg0: i32, %arg1: i32, %arg2: memref<8x128xf32, #tpu.memory_space<vmem>>, %arg3: memref<8x8x32xf32, #tpu.memory_space<vmem>>, %arg4: memref<8x8x32xf32, #tpu.memory_space<vmem>>, %arg5: memref<8x8x32xf32, #tpu.memory_space<vmem>>, %arg6: memref<8x128xf32, #tpu.memory_space<vmem>>, %arg7: memref<8x32xf32, #tpu.memory_space<vmem>>, %arg8: memref<8x32xf32, #tpu.memory_space<vmem>>, %arg9: memref<8x32xf32, #tpu.memory_space<vmem>>) attributes {dimension_semantics = [#tpu.dimension_semantics<parallel>, #tpu.dimension_semantics<arbitrary>], iteration_bounds = array<i64: 1, 1>, scalar_prefetch = 0 : i64, scratch_operands = 3 : i64, tpu.core_type = #tpu.core_type<tc>, window_params = [{transform_indices = @transform_0, window_bounds = array<i64: 8, 128>}, {transform_indices = @transform_1, window_bounds = array<i64: 8, 8, 32>}, {transform_indices = @transform_2, window_bounds = array<i64: 8, 8, 32>}, {transform_indices = @transform_3, window_bounds = array<i64: 8, 8, 32>}, {transform_indices = @transform_4, window_bounds = array<i64: 8, 128>}]} {
    %c0_i32 = arith.constant 0 : i32
    %0 = arith.cmpi eq, %arg1, %c0_i32 : i32
    %1 = arith.extui %0 : i1 to i32
    %c0_i32_0 = arith.constant 0 : i32
    %2 = arith.cmpi ne, %1, %c0_i32_0 : i32
    scf.if %2 {
      %cst_25 = arith.constant 0.000000e+00 : f32
      %21 = vector.broadcast %cst_25 : f32 to vector<8x32xf32>
      %c0_26 = arith.constant 0 : index
      %c0_27 = arith.constant 0 : index
      %22 = vector.load %arg7[%c0_26, %c0_27] : memref<8x32xf32, #tpu.memory_space<vmem>>, vector<8x32xf32>
      tpu.vector_store %arg7[%c0_26, %c0_27], %21 {strides = array<i32>} : memref<8x32xf32, #tpu.memory_space<vmem>>, vector<8x32xf32>,
      %cst_28 = arith.constant 0.000000e+00 : f32
      %23 = vector.broadcast %cst_28 : f32 to vector<8x32xf32>
      %c0_29 = arith.constant 0 : index
      %c0_30 = arith.constant 0 : index
      %24 = vector.load %arg8[%c0_29, %c0_30] : memref<8x32xf32, #tpu.memory_space<vmem>>, vector<8x32xf32>
      tpu.vector_store %arg8[%c0_29, %c0_30], %23 {strides = array<i32>} : memref<8x32xf32, #tpu.memory_space<vmem>>, vector<8x32xf32>,
      %cst_31 = arith.constant 0.000000e+00 : f32
      %25 = vector.broadcast %cst_31 : f32 to vector<8x32xf32>
      %c0_32 = arith.constant 0 : index
      %c0_33 = arith.constant 0 : index
      %26 = vector.load %arg9[%c0_32, %c0_33] : memref<8x32xf32, #tpu.memory_space<vmem>>, vector<8x32xf32>
      tpu.vector_store %arg9[%c0_32, %c0_33], %25 {strides = array<i32>} : memref<8x32xf32, #tpu.memory_space<vmem>>, vector<8x32xf32>,
    } else {
    }
    %c0 = arith.constant 0 : index
    %c0_1 = arith.constant 0 : index
    %3 = vector.load %arg7[%c0, %c0_1] : memref<8x32xf32, #tpu.memory_space<vmem>>, vector<8x32xf32>
    %c0_2 = arith.constant 0 : index
    %c0_3 = arith.constant 0 : index
    %c0_4 = arith.constant 0 : index
    %4 = vector.load %arg3[%c0_2, %c0_3, %c0_4] : memref<8x8x32xf32, #tpu.memory_space<vmem>>, vector<8x8x32xf32>
    %cst = arith.constant dense<0.000000e+00> : vector<8x32xf32>
    %5 = vector.multi_reduction <add>, %4, %cst [1] : vector<8x8x32xf32> to vector<8x32xf32>
    %6 = arith.addf %3, %5 : vector<8x32xf32>
    %c0_5 = arith.constant 0 : index
    %c0_6 = arith.constant 0 : index
    %7 = vector.load %arg7[%c0_5, %c0_6] : memref<8x32xf32, #tpu.memory_space<vmem>>, vector<8x32xf32>
    tpu.vector_store %arg7[%c0_5, %c0_6], %6 {strides = array<i32>} : memref<8x32xf32, #tpu.memory_space<vmem>>, vector<8x32xf32>,
    %c0_7 = arith.constant 0 : index
    %c0_8 = arith.constant 0 : index
    %8 = vector.load %arg8[%c0_7, %c0_8] : memref<8x32xf32, #tpu.memory_space<vmem>>, vector<8x32xf32>
    %c0_9 = arith.constant 0 : index
    %c0_10 = arith.constant 0 : index
    %c0_11 = arith.constant 0 : index
    %9 = vector.load %arg4[%c0_9, %c0_10, %c0_11] : memref<8x8x32xf32, #tpu.memory_space<vmem>>, vector<8x8x32xf32>
    %cst_12 = arith.constant dense<0.000000e+00> : vector<8x32xf32>
    %10 = vector.multi_reduction <add>, %9, %cst_12 [1] : vector<8x8x32xf32> to vector<8x32xf32>
    %11 = arith.addf %8, %10 : vector<8x32xf32>
    %c0_13 = arith.constant 0 : index
    %c0_14 = arith.constant 0 : index
    %12 = vector.load %arg8[%c0_13, %c0_14] : memref<8x32xf32, #tpu.memory_space<vmem>>, vector<8x32xf32>
    tpu.vector_store %arg8[%c0_13, %c0_14], %11 {strides = array<i32>} : memref<8x32xf32, #tpu.memory_space<vmem>>, vector<8x32xf32>,
    %c0_15 = arith.constant 0 : index
    %c0_16 = arith.constant 0 : index
    %13 = vector.load %arg9[%c0_15, %c0_16] : memref<8x32xf32, #tpu.memory_space<vmem>>, vector<8x32xf32>
    %c0_17 = arith.constant 0 : index
    %c0_18 = arith.constant 0 : index
    %c0_19 = arith.constant 0 : index
    %14 = vector.load %arg5[%c0_17, %c0_18, %c0_19] : memref<8x8x32xf32, #tpu.memory_space<vmem>>, vector<8x8x32xf32>
    %cst_20 = arith.constant dense<0.000000e+00> : vector<8x32xf32>
    %15 = vector.multi_reduction <add>, %14, %cst_20 [1] : vector<8x8x32xf32> to vector<8x32xf32>
    %16 = arith.addf %13, %15 : vector<8x32xf32>
    %c0_21 = arith.constant 0 : index
    %c0_22 = arith.constant 0 : index
    %17 = vector.load %arg9[%c0_21, %c0_22] : memref<8x32xf32, #tpu.memory_space<vmem>>, vector<8x32xf32>
    tpu.vector_store %arg9[%c0_21, %c0_22], %16 {strides = array<i32>} : memref<8x32xf32, #tpu.memory_space<vmem>>, vector<8x32xf32>,
    %c0_i32_23 = arith.constant 0 : i32
    %18 = arith.cmpi eq, %arg1, %c0_i32_23 : i32
    %19 = arith.extui %18 : i1 to i32
    %c0_i32_24 = arith.constant 0 : i32
    %20 = arith.cmpi ne, %19, %c0_i32_24 : i32
    scf.if %20 {
      %c0_25 = arith.constant 0 : index
      %c0_26 = arith.constant 0 : index
      %21 = vector.load %arg7[%c0_25, %c0_26] : memref<8x32xf32, #tpu.memory_space<vmem>>, vector<8x32xf32>
      %c0_27 = arith.constant 0 : index
      %c0_28 = arith.constant 0 : index
      %22 = vector.load %arg8[%c0_27, %c0_28] : memref<8x32xf32, #tpu.memory_space<vmem>>, vector<8x32xf32>
      %c0_29 = arith.constant 0 : index
      %c0_30 = arith.constant 0 : index
      %23 = vector.load %arg9[%c0_29, %c0_30] : memref<8x32xf32, #tpu.memory_space<vmem>>, vector<8x32xf32>
      %24 = arith.mulf %21, %21 : vector<8x32xf32>
      %cst_31 = arith.constant dense<0.000000e+00> : vector<8xf32>
      %25 = vector.multi_reduction <add>, %24, %cst_31 [1] : vector<8x32xf32> to vector<8xf32>
      %26 = vector.shape_cast %25 : vector<8xf32> to vector<8x1xf32>
      %cst_32 = arith.constant 1.000000e-16 : f32
      %27 = vector.broadcast %cst_32 : f32 to vector<8x1xf32>
      %28 = arith.maximumf %26, %27 : vector<8x1xf32>
      %29 = arith.mulf %22, %22 : vector<8x32xf32>
      %cst_33 = arith.constant dense<0.000000e+00> : vector<8xf32>
      %30 = vector.multi_reduction <add>, %29, %cst_33 [1] : vector<8x32xf32> to vector<8xf32>
      %31 = vector.shape_cast %30 : vector<8xf32> to vector<8x1xf32>
      %cst_34 = arith.constant 1.000000e-16 : f32
      %32 = vector.broadcast %cst_34 : f32 to vector<8x1xf32>
      %33 = arith.maximumf %31, %32 : vector<8x1xf32>
      %34 = arith.mulf %23, %23 : vector<8x32xf32>
      %cst_35 = arith.constant dense<0.000000e+00> : vector<8xf32>
      %35 = vector.multi_reduction <add>, %34, %cst_35 [1] : vector<8x32xf32> to vector<8xf32>
      %36 = vector.shape_cast %35 : vector<8xf32> to vector<8x1xf32>
      %cst_36 = arith.constant 1.000000e-16 : f32
      %37 = vector.broadcast %cst_36 : f32 to vector<8x1xf32>
      %38 = arith.maximumf %36, %37 : vector<8x1xf32>
      %39 = arith.mulf %21, %22 : vector<8x32xf32>
      %cst_37 = arith.constant dense<0.000000e+00> : vector<8xf32>
      %40 = vector.multi_reduction <add>, %39, %cst_37 [1] : vector<8x32xf32> to vector<8xf32>
      %41 = vector.shape_cast %40 : vector<8xf32> to vector<8x1xf32>
      %42 = arith.mulf %21, %23 : vector<8x32xf32>
      %cst_38 = arith.constant dense<0.000000e+00> : vector<8xf32>
      %43 = vector.multi_reduction <add>, %42, %cst_38 [1] : vector<8x32xf32> to vector<8xf32>
      %44 = vector.shape_cast %43 : vector<8xf32> to vector<8x1xf32>
      %45 = arith.mulf %28, %33 : vector<8x1xf32>
      %46 = math.rsqrt %45 : vector<8x1xf32>
      %47 = arith.mulf %41, %46 : vector<8x1xf32>
      %48 = arith.mulf %28, %38 : vector<8x1xf32>
      %49 = math.rsqrt %48 : vector<8x1xf32>
      %50 = arith.mulf %44, %49 : vector<8x1xf32>
      %c0_39 = arith.constant 0 : index
      %c0_40 = arith.constant 0 : index
      %51 = vector.load %arg2[%c0_39, %c0_40] : memref<8x128xf32, #tpu.memory_space<vmem>>, vector<8x128xf32>
      %cst_41 = arith.constant 1.000000e+00 : f32
      %52 = vector.broadcast %cst_41 : f32 to vector<8x1xf32>
      %53 = arith.subf %52, %47 : vector<8x1xf32>
      %54 = arith.mulf %53, %53 : vector<8x1xf32>
      %55 = vector.broadcast %50 : vector<8x1xf32> to vector<8x128xf32>
      %56 = arith.subf %55, %51 : vector<8x128xf32>
      %57 = arith.mulf %56, %56 : vector<8x128xf32>
      %58 = vector.broadcast %54 : vector<8x1xf32> to vector<8x128xf32>
      %59 = arith.addf %58, %57 : vector<8x128xf32>
      %c0_42 = arith.constant 0 : index
      %c0_43 = arith.constant 0 : index
      %60 = vector.load %arg6[%c0_42, %c0_43] : memref<8x128xf32, #tpu.memory_space<vmem>>, vector<8x128xf32>
      tpu.vector_store %arg6[%c0_42, %c0_43], %59 {strides = array<i32>} : memref<8x128xf32, #tpu.memory_space<vmem>>, vector<8x128xf32>,
    } else {
    }
    return
  }
  func.func @transform_0(%arg0: i32, %arg1: i32) -> (i32, i32) {
    %c0_i32 = arith.constant 0 : i32
    %c0_i32_0 = arith.constant 0 : i32
    return %arg0, %c0_i32 : i32, i32
  }
  func.func @transform_1(%arg0: i32, %arg1: i32) -> (i32, i32, i32) {
    %c0_i32 = arith.constant 0 : i32
    %c0_i32_0 = arith.constant 0 : i32
    return %arg0, %arg1, %c0_i32 : i32, i32, i32
  }
  func.func @transform_2(%arg0: i32, %arg1: i32) -> (i32, i32, i32) {
    %c0_i32 = arith.constant 0 : i32
    %c0_i32_0 = arith.constant 0 : i32
    return %arg0, %arg1, %c0_i32 : i32, i32, i32
  }
  func.func @transform_3(%arg0: i32, %arg1: i32) -> (i32, i32, i32) {
    %c0_i32 = arith.constant 0 : i32
    %c0_i32_0 = arith.constant 0 : i32
    return %arg0, %arg1, %c0_i32 : i32, i32, i32
  }
  func.func @transform_4(%arg0: i32, %arg1: i32) -> (i32, i32) {
    %c0_i32 = arith.constant 0 : i32
    %c0_i32_0 = arith.constant 0 : i32
    return %arg0, %c0_i32 : i32, i32
  }
}

</mosaic_0001>

<bundles_post_ra>
// kernel: _per_row_losses.1
= control target key start
LH: loop header
LB: loop body
LE: loop exit
PB: predicated region body
PF: predicated region fallthrough
CT: control target
= control target key end

     0   :  { %vm21_vm0 = vcmask 261120   ;;  %v333_v0 = vmov 0.0   ;;  %vm99_vm1 = vcmask 1041409   ;;  %vm101_vm2 = vcmask 1042434   ;;  %s498_s3 = inlined_call_operand.vmem [shape: f32[8,8,32], index: 3, kind: input, shape index: {}]   ;;  %s499_s1 = inlined_call_operand.vmem [shape: f32[8,8,32], index: 1, kind: input, shape index: {}]   ;;  %s500_s2 = inlined_call_operand.vmem [shape: f32[8,8,32], index: 2, kind: input, shape index: {}]   ;;  %s501_s0 = inlined_call_operand.vmem [shape: f32[8,128], index: 0, kind: input, shape index: {}]   ;;  %s502_s4 = inlined_call_operand.vmem [shape: f32[8,128], index: 4, kind: output, shape index: {}]  }
   0x1   :  { %24 = vst.msk [vmem:[#allocation4] sm:$0xff] %vm21_vm0, %v333_v0  ;;  %v200_v1 = vld [vmem:[%s498_s3] sm:$0xff]  ;;  %v201_v2 = vld [vmem:[%s498_s3 + $0x8] sm:$0xff]  ;;  %22 = vst.msk [vmem:[#allocation2] sm:$0xff] %vm21_vm0, %v333_v0  ;;  %vm103_vm3 = vcmask 1043459   ;;  %vm105_vm4 = vcmask 1044484  }
   0x2   :  { %23 = vst.msk [vmem:[#allocation3] sm:$0xff] %vm21_vm0, %v333_v0  ;;  %v202_v3 = vld [vmem:[%s498_s3 + $0x10] sm:$0xff]  ;;  %v203_v4 = vld [vmem:[%s498_s3 + $0x18] sm:$0xff]  ;;  %v204_v5 = vld [vmem:[%s498_s3 + $0x20] sm:$0xff]  ;;  %v208_v6 = vsel %vm21_vm0, %v200_v1, 0.0  ;;  %v215_v7 = vsel %vm21_vm0, %v201_v2, 0.0 }
   0x3   :  { %v205_v8 = vld [vmem:[%s498_s3 + $0x28] sm:$0xff]  ;;  %v206_v9 = vld [vmem:[%s498_s3 + $0x30] sm:$0xff]  ;;  %v207_v10 = vld [vmem:[%s498_s3 + $0x38] sm:$0xff]  ;;  %v209_v11 = vrot.slane %v208_v6, 4  ;;  %v216_v12 = vrot.slane %v215_v7, 4  ;;  %v222_v13 = vsel %vm21_vm0, %v202_v3, 0.0 }
   0x4   :  { %v223_v14 = vrot.slane %v222_v13, 4  ;;  %v229_v15 = vsel %vm21_vm0, %v203_v4, 0.0  ;;  %v236_v16 = vsel %vm21_vm0, %v204_v5, 0.0  ;;  %v243_v17 = vsel %vm21_vm0, %v205_v8, 0.0  ;;  %v26_v50 = vld [vmem:[%s499_s1] sm:$0xff]  ;;  %v27_v59 = vld [vmem:[%s499_s1 + $0x8] sm:$0xff] }
   0x5   :  { %v210_v18 = vadd.f32 %v209_v11, %v208_v6  ;;  %v217_v19 = vadd.f32 %v216_v12, %v215_v7  ;;  %v230_v20 = vrot.slane %v229_v15, 4  ;;  %v237_v21 = vrot.slane %v236_v16, 4  ;;  %v28_v60 = vld [vmem:[%s499_s1 + $0x10] sm:$0xff]  ;;  %v29_v5 = vld [vmem:[%s499_s1 + $0x18] sm:$0xff]  ;;  %v30_v7 = vld [vmem:[%s499_s1 + $0x20] sm:$0xff] }
   0x6   :  { %v224_v22 = vadd.f32 %v223_v14, %v222_v13  ;;  %v244_v23 = vrot.slane %v243_v17, 4  ;;  %v250_v24 = vsel %vm21_vm0, %v206_v9, 0.0  ;;  %v257_v25 = vsel %vm21_vm0, %v207_v10, 0.0 }
   0x7   :  { %v211_v26 = vrot.slane %v210_v18, 2  ;;  %v218_v27 = vrot.slane %v217_v19, 2  ;;  %v231_v28 = vadd.f32 %v230_v20, %v229_v15  ;;  %v238_v29 = vadd.f32 %v237_v21, %v236_v16 }
   0x8   :  { %vm107_vm5 = vcmask 1045509   ;;  %v225_v30 = vrot.slane %v224_v22, 2  ;;  %v245_v31 = vadd.f32 %v244_v23, %v243_v17  ;;  %v251_v32 = vrot.slane %v250_v24, 4  ;;  %v199_v15 = vld [vmem:[#allocation4] sm:$0xff]  ;;  %v31_v17 = vld [vmem:[%s499_s1 + $0x28] sm:$0xff] }
   0x9   :  { %v258_v33 = vrot.slane %v257_v25, 4  ;;  %vm109_vm6 = vcmask 1046534   ;;  %v212_v34 = vadd.f32 %v211_v26, %v210_v18  ;;  %v219_v35 = vadd.f32 %v218_v27, %v217_v19  ;;  %v32_v26 = vld [vmem:[%s499_s1 + $0x30] sm:$0xff]  ;;  %v33_v27 = vld [vmem:[%s499_s1 + $0x38] sm:$0xff] }
   0xa   :  { %v232_v36 = vrot.slane %v231_v28, 2  ;;  %v239_v37 = vrot.slane %v238_v29, 2  ;;  %vm111_vm7 = vcmask 1047559   ;;  %v226_v38 = vadd.f32 %v225_v30, %v224_v22 }
   0xb   :  { %v246_v39 = vrot.slane %v245_v31, 2  ;;  %v252_v40 = vadd.f32 %v251_v32, %v250_v24  ;;  %v259_v41 = vadd.f32 %v258_v33, %v257_v25  ;;  %v213_v42 = vrot.slane %v212_v34, 1 }
   0xc   :  { %v220_v43 = vrot.slane %v219_v35, 1  ;;  %v233_v44 = vadd.f32 %v232_v36, %v231_v28  ;;  %v240_v45 = vadd.f32 %v239_v37, %v238_v29  ;;  %v227_v46 = vrot.slane %v226_v38, 1 }
   0xd   :  { %v247_v47 = vadd.f32 %v246_v39, %v245_v31  ;;  %v253_v48 = vrot.slane %v252_v40, 2  ;;  %v260_v49 = vrot.slane %v259_v41, 2  ;;  %v214_v51 = vadd.f32 %v213_v42, %v212_v34 }
   0xe   :  { %v221_v52 = vadd.f32 %v220_v43, %v219_v35  ;;  %v234_v53 = vrot.slane %v233_v44, 1  ;;  %v241_v54 = vrot.slane %v240_v45, 1  ;;  %v228_v55 = vadd.f32 %v227_v46, %v226_v38 }
   0xf   :  { %v248_v56 = vrot.slane %v247_v47, 1  ;;  %v254_v57 = vadd.f32 %v253_v48, %v252_v40  ;;  %v261_v58 = vadd.f32 %v260_v49, %v259_v41  ;;  %v35_v0 = vsel %vm21_vm0, %v26_v50, 0.0 }
  0x10   :  { %v235_v61 = vadd.f32 %v234_v53, %v233_v44  ;;  %v242_v62 = vadd.f32 %v241_v54, %v240_v45  ;;  %v272_v63 = vsel %vm99_vm1, %v221_v52, %v214_v51  ;;  %v36_v8 = vrot.slane %v35_v0, 4  ;;  %v117_v51 = vld [vmem:[%s500_s2] sm:$0xff] }
  0x11   :  { %v249_v1 = vadd.f32 %v248_v56, %v247_v47  ;;  %v255_v2 = vrot.slane %v254_v57, 1  ;;  %v262_v3 = vrot.slane %v261_v58, 1  ;;  %v273_v4 = vsel %vm101_vm2, %v228_v55, %v272_v63 }
  0x12   :  { %v274_v6 = vsel %vm103_vm3, %v235_v61, %v273_v4  ;;  %v42_v9 = vsel %vm21_vm0, %v27_v59, 0.0  ;;  %v49_v10 = vsel %vm21_vm0, %v28_v60, 0.0  ;;  %v37_v18 = vadd.f32 %v36_v8, %v35_v0  ;;  %v118_v4 = vld [vmem:[%s500_s2 + $0x8] sm:$0xff] }
  0x13   :  { %v256_v11 = vadd.f32 %v255_v2, %v254_v57  ;;  %v263_v12 = vadd.f32 %v262_v3, %v261_v58  ;;  %v275_v13 = vsel %vm105_vm4, %v242_v62, %v274_v6  ;;  %v43_v14 = vrot.slane %v42_v9, 4 }
  0x14   :  { %v276_v16 = vsel %vm107_vm5, %v249_v1, %v275_v13  ;;  %v50_v19 = vrot.slane %v49_v10, 4  ;;  %v56_v20 = vsel %vm21_vm0, %v29_v5, 0.0  ;;  %v63_v24 = vsel %vm21_vm0, %v30_v7, 0.0 }
  0x15   :  { %v277_v21 = vsel %vm109_vm6, %v256_v11, %v276_v16  ;;  %v44_v22 = vadd.f32 %v43_v14, %v42_v9  ;;  %v57_v23 = vrot.slane %v56_v20, 4  ;;  %v38_v28 = vrot.slane %v37_v18, 2  ;;  %v119_v14 = vld [vmem:[%s500_s2 + $0x10] sm:$0xff] }
  0x16   :  { %v278_v25 = vsel %vm111_vm7, %v263_v12, %v277_v21  ;;  %v51_v29 = vadd.f32 %v50_v19, %v49_v10  ;;  %v64_v30 = vrot.slane %v63_v24, 4  ;;  %v70_v34 = vsel %vm21_vm0, %v31_v17, 0.0 }
  0x17   :  { %v280_v31 = vadd.f32 %v278_v25, %v199_v15  ;;  %v45_v32 = vrot.slane %v44_v22, 2  ;;  %v58_v33 = vadd.f32 %v57_v23, %v56_v20  ;;  %v39_v35 = vadd.f32 %v38_v28, %v37_v18  ;;  %v120_v15 = vld [vmem:[%s500_s2 + $0x18] sm:$0xff]  ;;  %v121_v23 = vld [vmem:[%s500_s2 + $0x20] sm:$0xff] }
  0x18   :  { %v52_v36 = vrot.slane %v51_v29, 2  ;;  %v65_v37 = vadd.f32 %v64_v30, %v63_v24  ;;  %v71_v38 = vrot.slane %v70_v34, 4  ;;  %v77_v41 = vsel %vm21_vm0, %v32_v26, 0.0  ;;  %v122_v24 = vld [vmem:[%s500_s2 + $0x28] sm:$0xff] }
  0x19   :  { %281 = vst.msk [vmem:[#allocation4] sm:$0xff] %vm21_vm0, %v280_v31  ;;  %v46_v39 = vadd.f32 %v45_v32, %v44_v22  ;;  %v59_v40 = vrot.slane %v58_v33, 2  ;;  %v84_v42 = vsel %vm21_vm0, %v33_v27, 0.0  ;;  %v40_v43 = vrot.slane %v39_v35, 1 }
  0x1a   :  { %v53_v44 = vadd.f32 %v52_v36, %v51_v29  ;;  %v66_v45 = vrot.slane %v65_v37, 2  ;;  %v72_v46 = vadd.f32 %v71_v38, %v70_v34  ;;  %v78_v49 = vrot.slane %v77_v41, 4  ;;  %v25_v34 = vld [vmem:[#allocation2] sm:$0xff] }
  0x1b   :  { %v47_v47 = vrot.slane %v46_v39, 1  ;;  %v60_v48 = vadd.f32 %v59_v40, %v58_v33  ;;  %v85_v50 = vrot.slane %v84_v42, 4  ;;  %v41_v52 = vadd.f32 %v40_v43, %v39_v35  ;;  %v123_v40 = vld [vmem:[%s500_s2 + $0x30] sm:$0xff] }
  0x1c   :  { %v54_v53 = vrot.slane %v53_v44, 1  ;;  %v67_v54 = vadd.f32 %v66_v45, %v65_v37  ;;  %v73_v55 = vrot.slane %v72_v46, 2  ;;  %v79_v58 = vadd.f32 %v78_v49, %v77_v41  ;;  %v124_v49 = vld [vmem:[%s500_s2 + $0x38] sm:$0xff] }
  0x1d   :  { %v48_v56 = vadd.f32 %v47_v47, %v46_v39  ;;  %v61_v57 = vrot.slane %v60_v48, 1  ;;  %v86_v59 = vadd.f32 %v85_v50, %v84_v42  ;;  %v125_v63 = vsel %vm21_vm0, %v117_v51, 0.0 }
  0x1e   :  { %v55_v60 = vadd.f32 %v54_v53, %v53_v44  ;;  %v68_v61 = vrot.slane %v67_v54, 1  ;;  %v74_v62 = vadd.f32 %v73_v55, %v72_v46  ;;  %v80_v1 = vrot.slane %v79_v58, 2 }
  0x1f   :  { %v62_v0 = vadd.f32 %v61_v57, %v60_v48  ;;  %v87_v2 = vrot.slane %v86_v59, 2  ;;  %v100_v3 = vsel %vm99_vm1, %v48_v56, %v41_v52  ;;  %v126_v9 = vrot.slane %v125_v63, 4 }
  0x20   :  { %v442_v5 = vld [vmem:[#allocation4] sm:$0xff]  ;;  %v69_v6 = vadd.f32 %v68_v61, %v67_v54  ;;  %v75_v7 = vrot.slane %v74_v62, 1  ;;  %v102_v8 = vsel %vm101_vm2, %v55_v60, %v100_v3  ;;  %v81_v11 = vadd.f32 %v80_v1, %v79_v58 }
  0x21   :  { %v298_v10 = vmul.f32 %v442_v5, %v442_v5  ;;  %v88_v12 = vadd.f32 %v87_v2, %v86_v59  ;;  %v104_v13 = vsel %vm103_vm3, %v62_v0, %v102_v8  ;;  %v127_v18 = vadd.f32 %v126_v9, %v125_v63 }
  0x22   :  { %v76_v16 = vadd.f32 %v75_v7, %v74_v62  ;;  %v106_v17 = vsel %vm105_vm4, %v69_v6, %v104_v13  ;;  %v132_v19 = vsel %vm21_vm0, %v118_v4, 0.0  ;;  %v82_v21 = vrot.slane %v81_v11, 1 }
  0x23   :  { %v299_v20 = vsel %vm21_vm0, %v298_v10, 0.0  ;;  %v89_v22 = vrot.slane %v88_v12, 1  ;;  %v133_v25 = vrot.slane %v132_v19, 4  ;;  %v128_v27 = vrot.slane %v127_v18, 2 }
  0x24   :  { %300 = vadd.xlane.f32.xlu1 %v299_v20  ;;  %v108_v26 = vsel %vm107_vm5, %v76_v16, %v106_v17  ;;  %v139_v28 = vsel %vm21_vm0, %v119_v14, 0.0  ;;  %v146_v29 = vsel %vm21_vm0, %v120_v15, 0.0  ;;  %v83_v30 = vadd.f32 %v82_v21, %v81_v11 }
  0x25   :  { %v90_v31 = vadd.f32 %v89_v22, %v88_v12  ;;  %v134_v32 = vadd.f32 %v133_v25, %v132_v19  ;;  %v140_v33 = vrot.slane %v139_v28, 4  ;;  %v129_v35 = vadd.f32 %v128_v27, %v127_v18 }
  0x26   :  { %v147_v36 = vrot.slane %v146_v29, 4  ;;  %v153_v37 = vsel %vm21_vm0, %v121_v23, 0.0  ;;  %v160_v38 = vsel %vm21_vm0, %v122_v24, 0.0  ;;  %v110_v39 = vsel %vm109_vm6, %v83_v30, %v108_v26 }
  0x27   :  { %v135_v41 = vrot.slane %v134_v32, 2  ;;  %v141_v42 = vadd.f32 %v140_v33, %v139_v28  ;;  %v154_v43 = vrot.slane %v153_v37, 4  ;;  %v112_v44 = vsel %vm111_vm7, %v90_v31, %v110_v39  ;;  %v116_v31 = vld [vmem:[#allocation3] sm:$0xff] }
  0x28   :  { %v130_v45 = vrot.slane %v129_v35, 1  ;;  %v148_v46 = vadd.f32 %v147_v36, %v146_v29  ;;  %v161_v47 = vrot.slane %v160_v38, 4  ;;  %v114_v48 = vadd.f32 %v112_v44, %v25_v34 }
  0x29   :  { %v136_v50 = vadd.f32 %v135_v41, %v134_v32  ;;  %v142_v51 = vrot.slane %v141_v42, 2  ;;  %v155_v52 = vadd.f32 %v154_v43, %v153_v37  ;;  %v167_v56 = vsel %vm21_vm0, %v123_v40, 0.0 }
  0x2a   :  { %v131_v53 = vadd.f32 %v130_v45, %v129_v35  ;;  %v149_v54 = vrot.slane %v148_v46, 2  ;;  %v162_v55 = vadd.f32 %v161_v47, %v160_v38  ;;  %115 = vst.msk [vmem:[#allocation2] sm:$0xff] %vm21_vm0, %v114_v48  ;;  %v168_v60 = vrot.slane %v167_v56, 4 }
  0x2b   :  { %v137_v57 = vrot.slane %v136_v50, 1  ;;  %v143_v58 = vadd.f32 %v142_v51, %v141_v42  ;;  %v156_v59 = vrot.slane %v155_v52, 2  ;;  %v174_v63 = vsel %vm21_vm0, %v124_v49, 0.0 }
  0x2c   :  { %v150_v61 = vadd.f32 %v149_v54, %v148_v46  ;;  %v163_v62 = vrot.slane %v162_v55, 2  ;;  %v169_v3 = vadd.f32 %v168_v60, %v167_v56  ;;  %v175_v7 = vrot.slane %v174_v63, 4 }
  0x2d   :  { %v138_v0 = vadd.f32 %v137_v57, %v136_v50  ;;  %v144_v1 = vrot.slane %v143_v58, 1  ;;  %v157_v2 = vadd.f32 %v156_v59, %v155_v52  ;;  %v317_v52 = vld [vmem:[%s501_s0] sm:$0xff] }
  0x2e   :  { %v151_v4 = vrot.slane %v150_v61, 1  ;;  %v164_v6 = vadd.f32 %v163_v62, %v162_v55  ;;  %v170_v10 = vrot.slane %v169_v3, 2  ;;  %v176_v14 = vadd.f32 %v175_v7, %v174_v63 }
  0x2f   :  { %v145_v8 = vadd.f32 %v144_v1, %v143_v58  ;;  %v158_v9 = vrot.slane %v157_v2, 1  ;;  %v189_v11 = vsel %vm99_vm1, %v138_v0, %v131_v53 }
  0x30   :  { %v152_v12 = vadd.f32 %v151_v4, %v150_v61  ;;  %v165_v13 = vrot.slane %v164_v6, 1  ;;  %v171_v16 = vadd.f32 %v170_v10, %v169_v3  ;;  %v177_v20 = vrot.slane %v176_v14, 2 }
  0x31   :  { %v159_v15 = vadd.f32 %v158_v9, %v157_v2  ;;  %v190_v17 = vsel %vm101_vm2, %v145_v8, %v189_v11  ;;  %v285_v18 = vld [vmem:[#allocation2] sm:$0xff] }
  0x32   :  { %v166_v19 = vadd.f32 %v165_v13, %v164_v6  ;;  %v191_v21 = vsel %vm103_vm3, %v152_v12, %v190_v17  ;;  %v288_v22 = vmul.f32 %v285_v18, %v285_v18  ;;  %v172_v23 = vrot.slane %v171_v16, 1 }
  0x33   :  { %v192_v24 = vsel %vm105_vm4, %v159_v15, %v191_v21  ;;  %v178_v25 = vadd.f32 %v177_v20, %v176_v14  ;;  %v307_v37 = vmul.f32 %v442_v5, %v285_v18 }
  0x34   :  { %v193_v26 = vsel %vm107_vm5, %v166_v19, %v192_v24  ;;  %v289_v27 = vsel %vm21_vm0, %v288_v22, 0.0  ;;  %v173_v28 = vadd.f32 %v172_v23, %v171_v16 }
  0x35   :  { %290 = vadd.xlane.f32.xlu0 %v289_v27  ;;  %v179_v29 = vrot.slane %v178_v25, 1  ;;  %v308_v41 = vsel %vm21_vm0, %v307_v37, 0.0 }
  0x36   :  { %v194_v30 = vsel %vm109_vm6, %v173_v28, %v193_v26 }
  0x37   :  { %v180_v32 = vadd.f32 %v179_v29, %v178_v25 }
  0x39   :  { %v195_v33 = vsel %vm111_vm7, %v180_v32, %v194_v30 }
  0x3a   :  { %v197_v34 = vadd.f32 %v195_v33, %v116_v31 }
  0x3c   :  { %198 = vst.msk [vmem:[#allocation3] sm:$0xff] %vm21_vm0, %v197_v34 }
  0x43   :  { %v286_v35 = vld [vmem:[#allocation3] sm:$0xff] }
  0x44   :  { %v293_v36 = vmul.f32 %v286_v35, %v286_v35  ;;  %v303_v38 = vmul.f32 %v286_v35, %v285_v18 }
  0x46   :  { %v294_v39 = vsel %vm21_vm0, %v293_v36, 0.0  ;;  %v304_v40 = vsel %vm21_vm0, %v303_v38, 0.0 }
  0x47   :  { %295 = vadd.xlane.f32.xlu0 %v294_v39  ;;  %305 = vadd.xlane.f32.xlu1 %v304_v40 }
  0x4b   :  { %309 = vadd.xlane.f32.xlu0 %v308_v41 }
  0xad   :  { %v301_v42 = vpop.xlane.xlu1 %300 }
  0xae   :  { %v302_v44 = vmax.f32 %v301_v42, 1e-16 }
  0xbe   :  { %v291_v43 = vpop.xlane.xlu0 %290 }
  0xbf   :  { %v292_v45 = vmax.f32 %v291_v43, 1e-16 }
  0xc1   :  { %v314_v46 = vmul.f32 %v302_v44, %v292_v45 }
  0xc3   :  { %329 = vrsqrt.f32 %v314_v46 }
  0xd0   :  { %v296_v47 = vpop.xlane.xlu0 %295  ;;  %v330_v5 = vpop.eup %329 }
  0xd1   :  { %v297_v48 = vmax.f32 %v296_v47, 1e-16  ;;  %v306_v53 = vpop.xlane.xlu1 %305 }
  0xd3   :  { %v311_v49 = vmul.f32 %v297_v48, %v292_v45 }
  0xd4   :  { %v310_v50 = vpop.xlane.xlu0 %309 }
  0xd5   :  { %331 = vrsqrt.f32 %v311_v49  ;;  %v316_v51 = vmul.f32 %v330_v5, %v310_v50 }
  0xd7   :  { %v320_v55 = vsub.f32 %v316_v51, %v317_v52 }
  0xd9   :  { %v321_v58 = vmul.f32 %v320_v55, %v320_v55 }
  0xe2   :  { %v332_v54 = vpop.eup %331 }
  0xe3   :  { %v313_v56 = vmul.f32 %v332_v54, %v306_v53 }
  0xe5   :  { %v318_v57 = vsub.f32 1.0, %v313_v56 }
  0xe7   :  { %v319_v59 = vmul.f32 %v318_v57, %v318_v57 }
  0xe9   :  { %v322_v60 = vadd.f32 %v321_v58, %v319_v59 }
  0xeb   :  { %323 = vst [vmem:[%s502_s4] sm:$0xff] %v322_v60 }

</bundles_post_ra>
